<compile_context>
chip_gen: v7x
topology: tpu7x:2x2x1
jax: 0.10.0
libtpu: 0.0.40
codegen_flags: <defaults>
</compile_context>

<pallas_src>
import jax
import jax.numpy as jnp
from jax.experimental import pallas as pl
from jax.experimental.pallas import tpu as pltpu

# ----- model hyper-parameters (small, deterministic, consistent with forward) -----
NUM_CLASSES = 10
NUM_GROUPS = 7
CLASSES_PER_GROUP = (NUM_CLASSES + NUM_GROUPS - 1) // NUM_GROUPS   # = 2
NUM_FEATURES = 128      # stand-in for efficientnet_v2_l's 1280-d feature vector
B, C_IN, H, W = 2, 4, 16, 16
HEAD_PAD = 128          # lane-dense padded width of the fused head output


def hierarchical_kernel(x_ref, w_bd_ref, w_head_ref, b_head_ref, out_ref):
    """Fused stand-in backbone + hierarchical classifier heads.

    x_ref:      (B*C, HW)     f32  NCHW input, pure reshape (lane dim = HW = 256)
    w_bd_ref:   (B*F, B*C)    f32  block-diagonal 1x1-conv weight (blocks = w_stem^T)
    w_head_ref: (F, HEAD_PAD) f32  [group | class_0 | ... | class_{G-1} | 0-pad],
                                   pre-scaled by 1/HW (pool scale folded in)
    b_head_ref: (1, HEAD_PAD) f32  concatenated + zero-padded head bias
    out_ref:    (B, HEAD_PAD) f32  lane-dense fused logits (sliced outside)
    """
    bb = out_ref.shape[0]                       # batch
    _, hw = x_ref.shape                         # spatial size
    f = w_bd_ref.shape[0] // bb                 # feature width

    # ---- stem: one 2-D MXU matmul; bf16 operands, f32 accumulation ----
    x_bf = x_ref[...].astype(jnp.bfloat16)
    w_bf = w_bd_ref[...].astype(jnp.bfloat16)
    h = jnp.dot(w_bf, x_bf, preferred_element_type=jnp.float32)     # (B*F, HW)
    h = jnp.maximum(h, 0.0)                                          # ReLU (f32, VPU)

    # ---- global average pool (1/HW already folded into w_head) ----
    # Sublane-dim split (B*F -> B, F) keeps (8,128) tiling; lane reduce on XLU.
    feat = jnp.sum(h.reshape(bb, f, hw), axis=-1)                    # (B, F)

    # ---- fused group + per-group class heads: one lane-dense f32 matmul ----
    logits = jnp.dot(feat, w_head_ref[...],
                     preferred_element_type=jnp.float32) + b_head_ref[...]
    out_ref[...] = logits                                            # (B, HEAD_PAD)


@jax.jit
def hierarchical_forward(x_nchw, w_bd, w_head, b_head):
    """Layout plumbing only; all heavy glue is hoisted to prepare_params()."""
    b, c, h, w = x_nchw.shape
    hw = h * w
    n_pad = w_head.shape[1]

    # NCHW -> (B*C, HW): pure reshape, no transpose, lane-dense last dim.
    x_flat = x_nchw.reshape(b * c, hw)

    fused = pl.pallas_call(
        hierarchical_kernel,
        out_shape=jax.ShapeDtypeStruct((b, n_pad), jnp.float32),
        in_specs=[pl.BlockSpec(memory_space=pltpu.MemorySpace.VMEM)] * 4,
        out_specs=pl.BlockSpec(memory_space=pltpu.MemorySpace.VMEM),
    )(x_flat, w_bd, w_head, b_head)

    group_logits = fused[:, :NUM_GROUPS]
    class_logits = fused[:, NUM_GROUPS:NUM_GROUPS + NUM_CLASSES]     # truncate
    return group_logits, class_logits


def prepare_params(w_stem, w_group, b_group, w_classes, b_classes, hw, batch):
    """One-time glue (runs once, outside the jitted forward):
      * block-diagonal stem weight so the per-batch 1x1-conv is a single 2-D matmul,
      * concatenated head weight/bias with the 1/HW pool scale folded into W,
      * zero-pad the head to a lane-dense width of HEAD_PAD.
    """
    w_stem_t = jnp.asarray(w_stem).T                                  # (F, C)
    b = int(batch)
    # kron(I_B, W^T): (B*F, B*C) block-diagonal — built once here, not per call.
    w_bd = jnp.kron(jnp.eye(b, dtype=w_stem_t.dtype), w_stem_t)      # (B*F, B*C)

    # cat([Linear_i(feat)]) == feat @ concat(W_i) + concat(b_i); group head first.
    w_all = jnp.concatenate([w_group] + list(w_classes), axis=1)      # (F, 21)
    b_all = jnp.concatenate([b_group] + list(b_classes), axis=0)      # (21,)
    total = w_all.shape[1]
    n_pad = -(-total // HEAD_PAD) * HEAD_PAD                          # -> 128 (lane-dense)
    w_head = jnp.pad(w_all / float(hw), ((0, 0), (0, n_pad - total)))  # fold 1/HW pool scale
    b_head = jnp.pad(b_all, (0, n_pad - total))[None, :]              # (1, 128)
    return w_bd, w_head, b_head


def make_params(key):
    """Deterministic synthetic parameters (shapes implied by the module's __init__)."""
    k_stem, k_g, k_gb, k_c, k_cb = jax.random.split(key, 5)
    w_stem = jax.random.normal(k_stem, (C_IN, NUM_FEATURES), jnp.float32) * 0.05
    w_group = jax.random.normal(k_g, (NUM_FEATURES, NUM_GROUPS), jnp.float32) * 0.05
    b_group = jax.random.normal(k_gb, (NUM_GROUPS,), jnp.float32) * 0.01
    ck = jax.random.split(k_c, NUM_GROUPS)
    cbk = jax.random.split(k_cb, NUM_GROUPS)
    w_classes = [jax.random.normal(ck[i], (NUM_FEATURES, CLASSES_PER_GROUP), jnp.float32) * 0.05
                 for i in range(NUM_GROUPS)]
    b_classes = [jax.random.normal(cbk[i], (CLASSES_PER_GROUP,), jnp.float32) * 0.01
                 for i in range(NUM_GROUPS)]
    return w_stem, w_group, b_group, w_classes, b_classes


if __name__ == "__main__":
    key = jax.random.PRNGKey(0)
    k_x, k_p = jax.random.split(key)
    x = jax.random.normal(k_x, (B, C_IN, H, W), jnp.float32)   # NCHW, like PyTorch

    w_stem, w_group, b_group, w_classes, b_classes = make_params(k_p)
    w_bd, w_head, b_head = prepare_params(
        w_stem, w_group, b_group, w_classes, b_classes, hw=H * W, batch=B)

    group_logits, class_logits = hierarchical_forward(x, w_bd, w_head, b_head)
    jax.block_until_ready((group_logits, class_logits))

    assert group_logits.shape == (B, NUM_GROUPS)
    assert class_logits.shape == (B, NUM_CLASSES)
    print("KERNEL_OK")
</pallas_src>

<mosaic_0001>
module attributes {stable_mosaic.version = 11 : i64} {
  func.func @hierarchical_kernel(%arg0: memref<8x256xf32, #tpu.memory_space<vmem>>, %arg1: memref<256x8xf32, #tpu.memory_space<vmem>>, %arg2: memref<128x128xf32, #tpu.memory_space<vmem>>, %arg3: memref<1x128xf32, #tpu.memory_space<vmem>>, %arg4: memref<2x128xf32, #tpu.memory_space<vmem>>) attributes {dimension_semantics = [], scalar_prefetch = 0 : i64, scratch_operands = 0 : i64, tpu.core_type = #tpu.core_type<tc>} {
    %c0 = arith.constant 0 : index
    %c0_0 = arith.constant 0 : index
    %0 = vector.load %arg0[%c0, %c0_0] : memref<8x256xf32, #tpu.memory_space<vmem>>, vector<8x256xf32>
    %1 = arith.truncf %0 : vector<8x256xf32> to vector<8x256xbf16>
    %c0_1 = arith.constant 0 : index
    %c0_2 = arith.constant 0 : index
    %2 = vector.load %arg1[%c0_1, %c0_2] : memref<256x8xf32, #tpu.memory_space<vmem>>, vector<256x8xf32>
    %3 = arith.truncf %2 : vector<256x8xf32> to vector<256x8xbf16>
    %cst = arith.constant dense<0.000000e+00> : vector<256x256xf32>
    %4 = tpu.matmul %3, %1, %cst {dimension_numbers = #tpu.dot_dimension_numbers<[1], [0], [0], [1], [0, 0, 1, 1], [], []>} : vector<256x8xbf16>, vector<8x256xbf16>, vector<256x256xf32> -> vector<256x256xf32>
    %cst_3 = arith.constant 0.000000e+00 : f32
    %5 = vector.broadcast %cst_3 : f32 to vector<256x256xf32>
    %6 = arith.maximumf %4, %5 : vector<256x256xf32>
    %7 = vector.shape_cast %6 : vector<256x256xf32> to vector<2x128x256xf32>
    %cst_4 = arith.constant dense<0.000000e+00> : vector<2x128xf32>
    %8 = vector.multi_reduction <add>, %7, %cst_4 [2] : vector<2x128x256xf32> to vector<2x128xf32>
    %c0_5 = arith.constant 0 : index
    %c0_6 = arith.constant 0 : index
    %9 = vector.load %arg2[%c0_5, %c0_6] : memref<128x128xf32, #tpu.memory_space<vmem>>, vector<128x128xf32>
    %cst_7 = arith.constant dense<0.000000e+00> : vector<2x128xf32>
    %10 = tpu.matmul %8, %9, %cst_7 {dimension_numbers = #tpu.dot_dimension_numbers<[1], [0], [0], [1], [0, 0, 1, 1], [], []>} : vector<2x128xf32>, vector<128x128xf32>, vector<2x128xf32> -> vector<2x128xf32>
    %c0_8 = arith.constant 0 : index
    %c0_9 = arith.constant 0 : index
    %11 = vector.load %arg3[%c0_8, %c0_9] : memref<1x128xf32, #tpu.memory_space<vmem>>, vector<1x128xf32>
    %12 = vector.broadcast %11 : vector<1x128xf32> to vector<2x128xf32>
    %13 = arith.addf %10, %12 : vector<2x128xf32>
    %c0_10 = arith.constant 0 : index
    %c0_11 = arith.constant 0 : index
    %14 = vector.load %arg4[%c0_10, %c0_11] : memref<2x128xf32, #tpu.memory_space<vmem>>, vector<2x128xf32>
    tpu.vector_store %arg4[%c0_10, %c0_11], %13 {strides = array<i32>} : memref<2x128xf32, #tpu.memory_space<vmem>>, vector<2x128xf32>,
    return
  }
}

</mosaic_0001>

<bundles_post_ra>
// kernel: hierarchical_forward.1
= control target key start
LH: loop header
LB: loop body
LE: loop exit
PB: predicated region body
PF: predicated region fallthrough
CT: control target
= control target key end

     0   :  { %vm119_vm0 = vcmask 1043456   ;;  %v902_v2 = vmov 0   ;;  %vm70_vm1 = vcmask 64512   ;;  %vm904_vm2 = vmmov 0   ;;  %s1263_s0 = inlined_call_operand.vmem [shape: f32[8,256], index: 0, kind: input, shape index: {}]   ;;  %s1264_s1 = inlined_call_operand.vmem [shape: f32[256,8], index: 1, kind: input, shape index: {}]   ;;  %s1265_s2 = inlined_call_operand.vmem [shape: f32[128,128], index: 2, kind: input, shape index: {}]   ;;  %s1266_s3 = inlined_call_operand.vmem [shape: f32[1,128], index: 3, kind: input, shape index: {}]   ;;  %s1267_s4 = inlined_call_operand.vmem [shape: f32[2,128], index: 4, kind: output, shape index: {}]  }
   0x1   :  { %v19_v0 = vld [vmem:[%s1263_s0 + $0x8] sm:$0xff]  ;;  %v18_v1 = vld [vmem:[%s1263_s0] sm:$0xff]  ;;  %158 = vmatprep.mubr.bf16.mxu0 %v902_v2  ;;  %248 = vmatprep.mubr.bf16.mxu1 %v902_v2  ;;  %v40_v7 = vld [vmem:[%s1264_s1 + $0x90] sm:$0xff]  ;;  %vm545_vm3 = vcmask 130112   ;;  %vm552_vm4 = vcmask 195712   ;;  %vm559_vm5 = vcmask 261312  }
   0x2   :  { %v22_v3 = vld [vmem:[%s1264_s1] sm:$0xff]  ;;  %v21_v4 = vpack.c.bf16 %v19_v0, %v19_v0  ;;  %v20_v5 = vpack.c.bf16 %v18_v1, %v18_v1  ;;  %v23_v6 = vld [vmem:[%s1264_s1 + $0x8] sm:$0xff]  ;;  %v41_v10 = vld [vmem:[%s1264_s1 + $0x98] sm:$0xff]  ;;  %vm566_vm6 = vcmask 326912   ;;  %vm573_vm7 = vcmask 392512  }
   0x3   :  { %v54_v9 = vpack.c.bf16 %v23_v6, %v22_v3  ;;  %v63_v11 = vpack.c.bf16 %v41_v10, %v40_v7  ;;  %v24_v12 = vld [vmem:[%s1264_s1 + $0x10] sm:$0xff]  ;;  %v25_v13 = vld [vmem:[%s1264_s1 + $0x18] sm:$0xff]  ;;  %v42_v14 = vld [vmem:[%s1264_s1 + $0xa0] sm:$0xff]  ;;  %vm580_vm8 = vcmask 458112   ;;  %vm587_vm9 = vcmask 523712  }
   0x4   :  { %802 = vmatprep.subr.msk.bf16.mxu0 %vm119_vm0, %v21_v4  ;;  %v121_v8 = vsel %vm119_vm0, %v20_v5, 0  ;;  %896 = vmatprep.subr.msk.bf16.mxu1 %vm119_vm0, %v21_v4  ;;  %v43_v15 = vld [vmem:[%s1264_s1 + $0xa8] sm:$0xff]  ;;  %v55_v16 = vpack.c.bf16 %v25_v13, %v24_v12  ;;  %v26_v18 = vld [vmem:[%s1264_s1 + $0x20] sm:$0xff]  ;;  %v44_v20 = vld [vmem:[%s1264_s1 + $0xb0] sm:$0xff]  ;;  %vm594_vm10 = vcmask 589312   ;;  %vm601_vm11 = vcmask 654912  }
   0x5   :  { %127 = vmatpush1.bf16.msra.mxu0 %v121_v8  ;;  %897 = vmatpush1.bf16.msra.mxu1 %v121_v8  ;;  %v64_v17 = vpack.c.bf16 %v43_v15, %v42_v14  ;;  %v27_v19 = vld [vmem:[%s1264_s1 + $0x28] sm:$0xff]  ;;  %v45_v21 = vld [vmem:[%s1264_s1 + $0xb8] sm:$0xff]  ;;  %v28_v24 = vld [vmem:[%s1264_s1 + $0x30] sm:$0xff]  ;;  %vm608_vm12 = vcmask 720512   ;;  %vm615_vm13 = vcmask 786112   ;;  %vm622_vm14 = vcmask 851712  }
   0x6   :  { %v56_v22 = vpack.c.bf16 %v27_v19, %v26_v18  ;;  %v65_v23 = vpack.c.bf16 %v45_v21, %v44_v20  ;;  %v29_v25 = vld [vmem:[%s1264_s1 + $0x38] sm:$0xff]  ;;  %v46_v26 = vld [vmem:[%s1264_s1 + $0xc0] sm:$0xff]  ;;  %v47_v27 = vld [vmem:[%s1264_s1 + $0xc8] sm:$0xff]  ;;  %vm629_vm15 = vcmask 917312   ;;  %vm636_vm0 = vcmask 982912  }
   0x7   :  { %v57_v28 = vpack.c.bf16 %v29_v25, %v28_v24  ;;  %v66_v29 = vpack.c.bf16 %v47_v27, %v46_v26  ;;  %v30_v30 = vld [vmem:[%s1264_s1 + $0x40] sm:$0xff]  ;;  %v31_v31 = vld [vmem:[%s1264_s1 + $0x48] sm:$0xff]  ;;  %v48_v32 = vld [vmem:[%s1264_s1 + $0xd0] sm:$0xff] }
   0x8   :  { %803 = vmatmul.mubr.msk.bf16.vlgmr.msra.gmra.mrb[0].mxu0 %vm70_vm1, %v54_v9  ;;  %812 = vmatmul.mubr.msk.bf16.vlgmr.msra.gmra.mrb[0].mxu1 %vm70_vm1, %v63_v11  ;;  %v49_v33 = vld [vmem:[%s1264_s1 + $0xd8] sm:$0xff]  ;;  %v58_v34 = vpack.c.bf16 %v31_v31, %v30_v30  ;;  %v32_v36 = vld [vmem:[%s1264_s1 + $0x50] sm:$0xff]  ;;  %v50_v38 = vld [vmem:[%s1264_s1 + $0xe0] sm:$0xff] }
   0x9   :  { %168 = vmatprep.mubr.bf16.mxu0 %v902_v2  ;;  %258 = vmatprep.mubr.bf16.mxu1 %v902_v2  ;;  %v67_v35 = vpack.c.bf16 %v49_v33, %v48_v32  ;;  %v33_v37 = vld [vmem:[%s1264_s1 + $0x58] sm:$0xff]  ;;  %v51_v39 = vld [vmem:[%s1264_s1 + $0xe8] sm:$0xff]  ;;  %v34_v42 = vld [vmem:[%s1264_s1 + $0x60] sm:$0xff] }
   0xa   :  { %v59_v40 = vpack.c.bf16 %v33_v37, %v32_v36  ;;  %v68_v41 = vpack.c.bf16 %v51_v39, %v50_v38  ;;  %v35_v43 = vld [vmem:[%s1264_s1 + $0x68] sm:$0xff]  ;;  %v52_v44 = vld [vmem:[%s1264_s1 + $0xf0] sm:$0xff]  ;;  %v53_v45 = vld [vmem:[%s1264_s1 + $0xf8] sm:$0xff] }
   0xb   :  { %v60_v46 = vpack.c.bf16 %v35_v43, %v34_v42  ;;  %v69_v47 = vpack.c.bf16 %v53_v45, %v52_v44  ;;  %v36_v48 = vld [vmem:[%s1264_s1 + $0x70] sm:$0xff]  ;;  %v37_v49 = vld [vmem:[%s1264_s1 + $0x78] sm:$0xff]  ;;  %v38_v51 = vld [vmem:[%s1264_s1 + $0x80] sm:$0xff] }
   0xc   :  { %v61_v50 = vpack.c.bf16 %v37_v49, %v36_v48  ;;  %v39_v52 = vld [vmem:[%s1264_s1 + $0x88] sm:$0xff] }
   0xd   :  { %v62_v53 = vpack.c.bf16 %v39_v52, %v38_v51 }
  0x10   :  { %804 = vmatmul.mubr.msk.bf16.gmra.mrb[4].mxu0 %vm70_vm1, %v55_v16  ;;  %813 = vmatmul.mubr.msk.bf16.gmra.mrb[4].mxu1 %vm70_vm1, %v64_v17 }
  0x11   :  { %178 = vmatprep.mubr.bf16.mxu0 %v902_v2  ;;  %268 = vmatprep.mubr.bf16.mxu1 %v902_v2 }
  0x18   :  { %805 = vmatmul.mubr.msk.bf16.gmra.mrb[8].mxu0 %vm70_vm1, %v56_v22  ;;  %814 = vmatmul.mubr.msk.bf16.gmra.mrb[8].mxu1 %vm70_vm1, %v65_v23 }
  0x19   :  { %188 = vmatprep.mubr.bf16.mxu0 %v902_v2  ;;  %278 = vmatprep.mubr.bf16.mxu1 %v902_v2 }
  0x20   :  { %806 = vmatmul.mubr.msk.bf16.gmra.mrb[12].mxu0 %vm70_vm1, %v57_v28  ;;  %815 = vmatmul.mubr.msk.bf16.gmra.mrb[12].mxu1 %vm70_vm1, %v66_v29 }
  0x21   :  { %198 = vmatprep.mubr.bf16.mxu0 %v902_v2  ;;  %288 = vmatprep.mubr.bf16.mxu1 %v902_v2 }
  0x28   :  { %807 = vmatmul.mubr.msk.bf16.gmra.mrb[16].mxu0 %vm70_vm1, %v58_v34  ;;  %816 = vmatmul.mubr.msk.bf16.gmra.mrb[16].mxu1 %vm70_vm1, %v67_v35 }
  0x29   :  { %208 = vmatprep.mubr.bf16.mxu0 %v902_v2  ;;  %298 = vmatprep.mubr.bf16.mxu1 %v902_v2 }
  0x30   :  { %808 = vmatmul.mubr.msk.bf16.gmra.mrb[20].mxu0 %vm70_vm1, %v59_v40  ;;  %817 = vmatmul.mubr.msk.bf16.gmra.mrb[20].mxu1 %vm70_vm1, %v68_v41 }
  0x31   :  { %218 = vmatprep.mubr.bf16.mxu0 %v902_v2  ;;  %308 = vmatprep.mubr.bf16.mxu1 %v902_v2 }
  0x38   :  { %809 = vmatmul.mubr.msk.bf16.gmra.mrb[24].mxu0 %vm70_vm1, %v60_v46  ;;  %818 = vmatmul.mubr.msk.bf16.gmra.mrb[24].mxu1 %vm70_vm1, %v69_v47 }
  0x39   :  { %228 = vmatprep.mubr.bf16.mxu0 %v902_v2 }
  0x40   :  { %810 = vmatmul.mubr.msk.bf16.gmra.mrb[28].mxu0 %vm70_vm1, %v61_v50 }
  0x41   :  { %238 = vmatprep.mubr.bf16.mxu0 %v902_v2 }
  0x48   :  { %811 = vmatmul.mubr.msk.bf16.gmra.mrb[32].mxu0 %vm70_vm1, %v62_v53  ;;  %vm643_vm1 = vcmask 1048512  }
  0xdb   :  { %v160_v54 = vpop.f32.mrb[0].mxu0  ;;  %v250_v55 = vpop.f32.mrb[0].mxu1 }
  0xdc   :  { %v319_v56 = vmax.f32 %v160_v54, 0.0  ;;  %v162_v57 = vpop.f32.mrb[1].mxu0  ;;  %v355_v58 = vmax.f32 %v250_v55, 0.0  ;;  %v252_v59 = vpop.f32.mrb[1].mxu1 }
  0xdd   :  { %v320_v60 = vmax.f32 %v162_v57, 0.0  ;;  %v164_v61 = vpop.f32.mrb[2].mxu0  ;;  %v356_v62 = vmax.f32 %v252_v59, 0.0  ;;  %v254_v63 = vpop.f32.mrb[2].mxu1 }
  0xde   :  { %v321_v0 = vmax.f32 %v164_v61, 0.0  ;;  %v166_v1 = vpop.f32.mrb[3].mxu0  ;;  %v357_v2 = vmax.f32 %v254_v63, 0.0  ;;  %v256_v3 = vpop.f32.mrb[3].mxu1 }
  0xdf   :  { %v322_v4 = vmax.f32 %v166_v1, 0.0  ;;  %v383_v5 = vadd.f32 %v320_v60, %v319_v56  ;;  %v358_v6 = vmax.f32 %v256_v3, 0.0  ;;  %v437_v7 = vadd.f32 %v356_v62, %v355_v58 }
  0xe1   :  { %384 = vadd.xlane.f32.xlu0 %v383_v5  ;;  %v386_v8 = vadd.f32 %v322_v4, %v321_v0  ;;  %438 = vadd.xlane.f32.xlu1 %v437_v7  ;;  %v440_v9 = vadd.f32 %v358_v6, %v357_v2 }
  0xe3   :  { %v170_v10 = vpop.f32.mrb[4].mxu0  ;;  %v260_v11 = vpop.f32.mrb[4].mxu1 }
  0xe4   :  { %v323_v12 = vmax.f32 %v170_v10, 0.0  ;;  %v172_v13 = vpop.f32.mrb[5].mxu0  ;;  %v359_v14 = vmax.f32 %v260_v11, 0.0  ;;  %v262_v15 = vpop.f32.mrb[5].mxu1 }
  0xe5   :  { %v324_v16 = vmax.f32 %v172_v13, 0.0  ;;  %387 = vadd.xlane.f32.xlu0 %v386_v8  ;;  %v174_v17 = vpop.f32.mrb[6].mxu0  ;;  %v360_v18 = vmax.f32 %v262_v15, 0.0  ;;  %441 = vadd.xlane.f32.xlu1 %v440_v9  ;;  %v264_v19 = vpop.f32.mrb[6].mxu1 }
  0xe6   :  { %v325_v20 = vmax.f32 %v174_v17, 0.0  ;;  %v176_v21 = vpop.f32.mrb[7].mxu0  ;;  %v361_v22 = vmax.f32 %v264_v19, 0.0  ;;  %v266_v23 = vpop.f32.mrb[7].mxu1 }
  0xe7   :  { %v326_v24 = vmax.f32 %v176_v21, 0.0  ;;  %v389_v25 = vadd.f32 %v324_v16, %v323_v12  ;;  %v362_v26 = vmax.f32 %v266_v23, 0.0  ;;  %v443_v27 = vadd.f32 %v360_v18, %v359_v14 }
  0xe9   :  { %390 = vadd.xlane.f32.xlu0 %v389_v25  ;;  %v392_v28 = vadd.f32 %v326_v24, %v325_v20  ;;  %444 = vadd.xlane.f32.xlu1 %v443_v27  ;;  %v446_v29 = vadd.f32 %v362_v26, %v361_v22 }
  0xeb   :  { %v180_v30 = vpop.f32.mrb[8].mxu0  ;;  %v270_v31 = vpop.f32.mrb[8].mxu1 }
  0xec   :  { %v327_v32 = vmax.f32 %v180_v30, 0.0  ;;  %v182_v33 = vpop.f32.mrb[9].mxu0  ;;  %v363_v34 = vmax.f32 %v270_v31, 0.0  ;;  %v272_v35 = vpop.f32.mrb[9].mxu1 }
  0xed   :  { %v328_v36 = vmax.f32 %v182_v33, 0.0  ;;  %393 = vadd.xlane.f32.xlu0 %v392_v28  ;;  %v184_v37 = vpop.f32.mrb[10].mxu0  ;;  %v364_v38 = vmax.f32 %v272_v35, 0.0  ;;  %447 = vadd.xlane.f32.xlu1 %v446_v29  ;;  %v274_v39 = vpop.f32.mrb[10].mxu1 }
  0xee   :  { %v329_v40 = vmax.f32 %v184_v37, 0.0  ;;  %v186_v41 = vpop.f32.mrb[11].mxu0  ;;  %v365_v42 = vmax.f32 %v274_v39, 0.0  ;;  %v276_v43 = vpop.f32.mrb[11].mxu1 }
  0xef   :  { %v330_v44 = vmax.f32 %v186_v41, 0.0  ;;  %v395_v45 = vadd.f32 %v328_v36, %v327_v32  ;;  %v366_v46 = vmax.f32 %v276_v43, 0.0  ;;  %v449_v47 = vadd.f32 %v364_v38, %v363_v34 }
  0xf1   :  { %396 = vadd.xlane.f32.xlu0 %v395_v45  ;;  %v398_v48 = vadd.f32 %v330_v44, %v329_v40  ;;  %450 = vadd.xlane.f32.xlu1 %v449_v47  ;;  %v452_v49 = vadd.f32 %v366_v46, %v365_v42 }
  0xf3   :  { %v190_v50 = vpop.f32.mrb[12].mxu0  ;;  %v280_v51 = vpop.f32.mrb[12].mxu1 }
  0xf4   :  { %v331_v52 = vmax.f32 %v190_v50, 0.0  ;;  %v192_v53 = vpop.f32.mrb[13].mxu0  ;;  %v367_v54 = vmax.f32 %v280_v51, 0.0  ;;  %v282_v55 = vpop.f32.mrb[13].mxu1 }
  0xf5   :  { %v332_v56 = vmax.f32 %v192_v53, 0.0  ;;  %399 = vadd.xlane.f32.xlu0 %v398_v48  ;;  %v194_v57 = vpop.f32.mrb[14].mxu0  ;;  %v368_v58 = vmax.f32 %v282_v55, 0.0  ;;  %453 = vadd.xlane.f32.xlu1 %v452_v49  ;;  %v284_v59 = vpop.f32.mrb[14].mxu1 }
  0xf6   :  { %v333_v60 = vmax.f32 %v194_v57, 0.0  ;;  %v196_v61 = vpop.f32.mrb[15].mxu0  ;;  %v369_v62 = vmax.f32 %v284_v59, 0.0  ;;  %v286_v63 = vpop.f32.mrb[15].mxu1 }
  0xf7   :  { %v334_v0 = vmax.f32 %v196_v61, 0.0  ;;  %v401_v1 = vadd.f32 %v332_v56, %v331_v52  ;;  %v370_v2 = vmax.f32 %v286_v63, 0.0  ;;  %v455_v3 = vadd.f32 %v368_v58, %v367_v54 }
  0xf9   :  { %402 = vadd.xlane.f32.xlu0 %v401_v1  ;;  %v404_v4 = vadd.f32 %v334_v0, %v333_v60  ;;  %456 = vadd.xlane.f32.xlu1 %v455_v3  ;;  %v458_v5 = vadd.f32 %v370_v2, %v369_v62  ;;  %v903_v60 = vmov 0.0|0.0   ;;  %v479_v3 = vld [vmem:[%s1265_s2] sm:$0xff] }
  0xfa   :  { %872 = vmatprep.subr.bf16.mxu1 %v903_v60 }
  0xfb   :  { %v200_v6 = vpop.f32.mrb[16].mxu0  ;;  %v290_v7 = vpop.f32.mrb[16].mxu1 }
  0xfc   :  { %v335_v8 = vmax.f32 %v200_v6, 0.0  ;;  %v202_v9 = vpop.f32.mrb[17].mxu0  ;;  %v371_v10 = vmax.f32 %v290_v7, 0.0  ;;  %v292_v11 = vpop.f32.mrb[17].mxu1 }
  0xfd   :  { %v336_v12 = vmax.f32 %v202_v9, 0.0  ;;  %405 = vadd.xlane.f32.xlu0 %v404_v4  ;;  %v204_v13 = vpop.f32.mrb[18].mxu0  ;;  %v372_v14 = vmax.f32 %v292_v11, 0.0  ;;  %459 = vadd.xlane.f32.xlu1 %v458_v5  ;;  %v294_v15 = vpop.f32.mrb[18].mxu1  ;;  %v480_v4 = vld [vmem:[%s1265_s2 + $0x8] sm:$0xff]  ;;  %v481_v11 = vld [vmem:[%s1265_s2 + $0x10] sm:$0xff] }
  0xfe   :  { %v337_v16 = vmax.f32 %v204_v13, 0.0  ;;  %v206_v17 = vpop.f32.mrb[19].mxu0  ;;  %v373_v18 = vmax.f32 %v294_v15, 0.0  ;;  %v296_v19 = vpop.f32.mrb[19].mxu1  ;;  %v873_v6 = vpack.c.bf16 %v480_v4, %v479_v3  ;;  %v534_v3 = vlaneseq }
  0xff   :  { %v338_v20 = vmax.f32 %v206_v17, 0.0  ;;  %v407_v21 = vadd.f32 %v336_v12, %v335_v8  ;;  %v374_v22 = vmax.f32 %v296_v19, 0.0  ;;  %v461_v23 = vadd.f32 %v372_v14, %v371_v10  ;;  %v482_v12 = vld [vmem:[%s1265_s2 + $0x18] sm:$0xff] }
 0x100   :  { %874 = vmatpush3.bf16.msra.mxu1 %v873_v6  ;;  %v876_v15 = vpack.c.bf16 %v482_v12, %v481_v11 }
 0x101   :  { %408 = vadd.xlane.f32.xlu0 %v407_v21  ;;  %v410_v24 = vadd.f32 %v338_v20, %v337_v16  ;;  %462 = vadd.xlane.f32.xlu1 %v461_v23  ;;  %v464_v25 = vadd.f32 %v374_v22, %v373_v18 }
 0x102   :  { %875 = vmatprep.subr.bf16.mxu1 %v903_v60 }
 0x103   :  { %v210_v26 = vpop.f32.mrb[20].mxu0  ;;  %v300_v27 = vpop.f32.mrb[20].mxu1 }
 0x104   :  { %v339_v28 = vmax.f32 %v210_v26, 0.0  ;;  %v212_v29 = vpop.f32.mrb[21].mxu0  ;;  %v375_v30 = vmax.f32 %v300_v27, 0.0  ;;  %v302_v31 = vpop.f32.mrb[21].mxu1  ;;  %877 = vmatpush3.bf16.msra.mxu1 %v876_v15 }
 0x105   :  { %v340_v32 = vmax.f32 %v212_v29, 0.0  ;;  %411 = vadd.xlane.f32.xlu0 %v410_v24  ;;  %v214_v33 = vpop.f32.mrb[22].mxu0  ;;  %465 = vadd.xlane.f32.xlu1 %v464_v25  ;;  %v376_v34 = vmax.f32 %v302_v31, 0.0  ;;  %v304_v35 = vpop.f32.mrb[22].mxu1  ;;  %v483_v24 = vld [vmem:[%s1265_s2 + $0x20] sm:$0xff]  ;;  %v484_v25 = vld [vmem:[%s1265_s2 + $0x28] sm:$0xff] }
 0x106   :  { %v341_v36 = vmax.f32 %v214_v33, 0.0  ;;  %v216_v37 = vpop.f32.mrb[23].mxu0  ;;  %v377_v38 = vmax.f32 %v304_v35, 0.0  ;;  %v306_v39 = vpop.f32.mrb[23].mxu1  ;;  %878 = vmatprep.subr.bf16.mxu1 %v903_v60  ;;  %v486_v33 = vld [vmem:[%s1265_s2 + $0x38] sm:$0xff]  ;;  %v487_v35 = vld [vmem:[%s1265_s2 + $0x40] sm:$0xff] }
 0x107   :  { %v342_v40 = vmax.f32 %v216_v37, 0.0  ;;  %v413_v41 = vadd.f32 %v340_v32, %v339_v28  ;;  %v378_v42 = vmax.f32 %v306_v39, 0.0  ;;  %v1065_v43 = vadd.f32 %v376_v34, %v375_v30  ;;  %v485_v32 = vld [vmem:[%s1265_s2 + $0x30] sm:$0xff]  ;;  %v490_v39 = vld [vmem:[%s1265_s2 + $0x58] sm:$0xff] }
 0x108   :  { %v879_v28 = vpack.c.bf16 %v484_v25, %v483_v24  ;;  %v882_v34 = vpack.c.bf16 %v486_v33, %v485_v32 }
 0x109   :  { %414 = vadd.xlane.f32.xlu0 %v413_v41  ;;  %v416_v44 = vadd.f32 %v342_v40, %v341_v36  ;;  %v1067_v45 = vadd.f32 %v378_v42, %v377_v38  ;;  %v488_v36 = vld [vmem:[%s1265_s2 + $0x48] sm:$0xff]  ;;  %v489_v38 = vld [vmem:[%s1265_s2 + $0x50] sm:$0xff]  ;;  %v491_v41 = vld [vmem:[%s1265_s2 + $0x60] sm:$0xff] }
 0x10a   :  { %880 = vmatpush3.bf16.msra.mxu1 %v879_v28  ;;  %v885_v37 = vpack.c.bf16 %v488_v36, %v487_v35  ;;  %v888_v40 = vpack.c.bf16 %v490_v39, %v489_v38  ;;  %v492_v42 = vld [vmem:[%s1265_s2 + $0x68] sm:$0xff] }
 0x10b   :  { %v220_v46 = vpop.f32.mrb[24].mxu0  ;;  %v310_v47 = vpop.f32.mrb[24].mxu1  ;;  %881 = vmatprep.subr.bf16.mxu1 %v903_v60 }
 0x10c   :  { %v343_v48 = vmax.f32 %v220_v46, 0.0  ;;  %v222_v49 = vpop.f32.mrb[25].mxu0  ;;  %v379_v50 = vmax.f32 %v310_v47, 0.0  ;;  %v312_v51 = vpop.f32.mrb[25].mxu1  ;;  %v905_v47 = vmov 0.0  }
 0x10d   :  { %v344_v52 = vmax.f32 %v222_v49, 0.0  ;;  %417 = vadd.xlane.f32.xlu0 %v416_v44  ;;  %v224_v53 = vpop.f32.mrb[26].mxu0  ;;  %v380_v54 = vmax.f32 %v312_v51, 0.0  ;;  %v314_v55 = vpop.f32.mrb[26].mxu1  ;;  %v493_v44 = vld [vmem:[%s1265_s2 + $0x70] sm:$0xff]  ;;  %869 = vmatprep.mubr.msk.f32.mxu1 %vm904_vm2, %v905_v47  ;;  %vm724_vm2 = vcmask 1041409  }
 0x10e   :  { %v345_v56 = vmax.f32 %v224_v53, 0.0  ;;  %v226_v57 = vpop.f32.mrb[27].mxu0  ;;  %v381_v58 = vmax.f32 %v314_v55, 0.0  ;;  %v316_v59 = vpop.f32.mrb[27].mxu1  ;;  %883 = vmatpush3.bf16.msra.mxu1 %v882_v34 }
 0x10f   :  { %v346_v61 = vmax.f32 %v226_v57, 0.0  ;;  %v419_v62 = vadd.f32 %v344_v52, %v343_v48  ;;  %v382_v63 = vmax.f32 %v316_v59, 0.0  ;;  %v473_v0 = vadd.f32 %v380_v54, %v379_v50  ;;  %884 = vmatprep.subr.bf16.mxu1 %v903_v60 }
 0x111   :  { %420 = vadd.xlane.f32.xlu0 %v419_v62  ;;  %v422_v1 = vadd.f32 %v346_v61, %v345_v56  ;;  %v476_v2 = vadd.f32 %v382_v63, %v381_v58 }
 0x112   :  { %886 = vmatpush3.bf16.msra.mxu1 %v885_v37 }
 0x113   :  { %v230_v5 = vpop.f32.mrb[28].mxu0  ;;  %887 = vmatprep.subr.bf16.mxu1 %v903_v60 }
 0x114   :  { %v347_v7 = vmax.f32 %v230_v5, 0.0  ;;  %v232_v8 = vpop.f32.mrb[29].mxu0  ;;  %v535_v5 = vand.u32 127, %v534_v3 }
 0x115   :  { %v348_v9 = vmax.f32 %v232_v8, 0.0  ;;  %423 = vadd.xlane.f32.xlu0 %v422_v1  ;;  %v234_v10 = vpop.f32.mrb[30].mxu0 }
 0x116   :  { %v349_v13 = vmax.f32 %v234_v10, 0.0  ;;  %v236_v14 = vpop.f32.mrb[31].mxu0  ;;  %889 = vmatpush3.bf16.msra.mxu1 %v888_v40  ;;  %v540_v8 = vadd.s32 4294967288, %v535_v5  ;;  %v554_v12 = vadd.s32 4294967272, %v535_v5  ;;  %v638_v38 = vadd.s32 4294967176, %v535_v5 }
 0x117   :  { %v350_v16 = vmax.f32 %v236_v14, 0.0  ;;  %v425_v17 = vadd.f32 %v348_v9, %v347_v7  ;;  %890 = vmatprep.subr.bf16.mxu1 %v903_v60  ;;  %v537_v7 = vshrl.u32 %v534_v3, 7  ;;  %v547_v9 = vadd.s32 4294967280, %v535_v5 }
 0x119   :  { %426 = vadd.xlane.f32.xlu0 %v425_v17  ;;  %v428_v18 = vadd.f32 %v350_v16, %v349_v13  ;;  %v538_v11 = vsub.s32 %v535_v5, %v537_v7  ;;  %v561_v13 = vadd.s32 4294967264, %v535_v5  ;;  %v543_v14 = vsub.s32 %v540_v8, %v537_v7 }
 0x11a   :  { %v550_v15 = vsub.s32 %v547_v9, %v537_v7  ;;  %v568_v16 = vadd.s32 4294967256, %v535_v5  ;;  %v557_v25 = vsub.s32 %v554_v12, %v537_v7 }
 0x11b   :  { %v240_v19 = vpop.f32.mrb[32].mxu0 }
 0x11c   :  { %v351_v20 = vmax.f32 %v240_v19, 0.0  ;;  %v242_v21 = vpop.f32.mrb[33].mxu0  ;;  %v582_v19 = vadd.s32 4294967240, %v535_v5  ;;  %v571_v28 = vsub.s32 %v568_v16, %v537_v7 }
 0x11d   :  { %v352_v22 = vmax.f32 %v242_v21, 0.0  ;;  %429 = vadd.xlane.f32.xlu0 %v428_v18  ;;  %v244_v23 = vpop.f32.mrb[34].mxu0  ;;  %v575_v18 = vadd.s32 4294967248, %v535_v5  ;;  %v596_v21 = vadd.s32 4294967224, %v535_v5 }
 0x11e   :  { %v353_v26 = vmax.f32 %v244_v23, 0.0  ;;  %v246_v27 = vpop.f32.mrb[35].mxu0  ;;  %v610_v23 = vadd.s32 4294967208, %v535_v5  ;;  %v585_v32 = vsub.s32 %v582_v19, %v537_v7 }
 0x11f   :  { %v354_v29 = vmax.f32 %v246_v27, 0.0  ;;  %v431_v30 = vadd.f32 %v352_v22, %v351_v20  ;;  %v589_v20 = vadd.s32 4294967232, %v535_v5  ;;  %v603_v22 = vadd.s32 4294967216, %v535_v5 }
 0x120   :  { %v617_v27 = vadd.s32 4294967200, %v535_v5  ;;  %v1175_v34 = vsub.s32 %v596_v21, %v537_v7  ;;  %v1179_v36 = vsub.s32 %v610_v23, %v537_v7 }
 0x121   :  { %432 = vadd.xlane.f32.xlu1 %v431_v30  ;;  %v434_v31 = vadd.f32 %v354_v29, %v353_v26  ;;  %v564_v26 = vsub.s32 %v561_v13, %v537_v7  ;;  %v624_v29 = vadd.s32 4294967192, %v535_v5  ;;  %v631_v30 = vadd.s32 4294967184, %v535_v5 }
 0x122   :  { %v1173_v33 = vsub.s32 %v589_v20, %v537_v7  ;;  %v1177_v35 = vsub.s32 %v603_v22, %v537_v7 }
 0x123   :  { %v1190_v47 = vsub.s32 %v631_v30, %v537_v7 }
 0x125   :  { %435 = vadd.xlane.f32.xlu1 %v434_v31  ;;  %v578_v31 = vsub.s32 %v575_v18, %v537_v7 }
 0x129   :  { %468 = vadd.xlane.f32.xlu1 %v1065_v43  ;;  %v891_v43 = vpack.c.bf16 %v492_v42, %v491_v41  ;;  %v1184_v41 = vsub.s32 %v617_v27, %v537_v7 }
 0x12b   :  { %892 = vmatpush3.bf16.msra.mxu1 %v891_v43 }
 0x12c   :  { %893 = vmatprep.subr.bf16.mxu1 %v903_v60 }
 0x12d   :  { %471 = vadd.xlane.f32.xlu1 %v1067_v45  ;;  %v494_v45 = vld [vmem:[%s1265_s2 + $0x78] sm:$0xff] }
 0x12e   :  { %v894_v46 = vpack.c.bf16 %v494_v45, %v493_v44 }
 0x130   :  { %895 = vmatpush3.bf16.msra.mxu1 %v894_v46  ;;  %v1188_v46 = vsub.s32 %v624_v29, %v537_v7 }
 0x131   :  { %474 = vadd.xlane.f32.xlu1 %v473_v0 }
 0x135   :  { %477 = vadd.xlane.f32.xlu1 %v476_v2 }
 0x16e   :  { %v1127_v48 = vpop.xlane.xlu0 %384  ;;  %v1131_v50 = vpop.xlane.xlu1 %438 }
 0x16f   :  { %v657_v45 = vrot.slane %v1131_v50, %v550_v15  ;;  %v539_v3 = vrot.slane %v1127_v48, %v538_v11  ;;  %v1198_v50 = vsub.s32 %v638_v38, %v537_v7 }
 0x172   :  { %v1129_v49 = vpop.xlane.xlu0 %387  ;;  %v1137_v53 = vpop.xlane.xlu1 %441 }
 0x173   :  { %v544_v40 = vrot.slane %v1129_v49, %v543_v14  ;;  %v662_v49 = vrot.slane %v1137_v53, %v557_v25 }
 0x176   :  { %v1133_v51 = vpop.xlane.xlu0 %390  ;;  %v1141_v55 = vpop.xlane.xlu1 %444 }
 0x177   :  { %v551_v44 = vrot.slane %v1133_v51, %v550_v15  ;;  %v667_v51 = vrot.slane %v1141_v55, %v564_v26 }
 0x17a   :  { %v1135_v52 = vpop.xlane.xlu0 %393  ;;  %v1145_v57 = vpop.xlane.xlu1 %447 }
 0x17b   :  { %v558_v5 = vrot.slane %v1135_v52, %v557_v25  ;;  %v672_v52 = vrot.slane %v1145_v57, %v571_v28 }
 0x17e   :  { %v1139_v54 = vpop.xlane.xlu0 %396  ;;  %v1149_v59 = vpop.xlane.xlu1 %450 }
 0x17f   :  { %v565_v9 = vrot.slane %v1139_v54, %v564_v26  ;;  %v677_v55 = vrot.slane %v1149_v59, %v578_v31 }
 0x182   :  { %v1143_v56 = vpop.xlane.xlu0 %399  ;;  %v1153_v61 = vpop.xlane.xlu1 %453 }
 0x183   :  { %v572_v48 = vrot.slane %v1143_v56, %v571_v28  ;;  %v682_v56 = vrot.slane %v1153_v61, %v585_v32 }
 0x186   :  { %v1147_v58 = vpop.xlane.xlu0 %402  ;;  %v1157_v63 = vpop.xlane.xlu1 %456 }
 0x187   :  { %v579_v54 = vrot.slane %v1147_v58, %v578_v31  ;;  %v687_v58 = vrot.slane %v1157_v63, %v1173_v33 }
 0x18a   :  { %v1151_v60 = vpop.xlane.xlu0 %405  ;;  %v1161_v1 = vpop.xlane.xlu1 %459 }
 0x18b   :  { %v586_v18 = vrot.slane %v1151_v60, %v585_v32  ;;  %v692_v61 = vrot.slane %v1161_v1, %v1175_v34 }
 0x18e   :  { %v1155_v62 = vpop.xlane.xlu0 %408  ;;  %v1165_v4 = vpop.xlane.xlu1 %462 }
 0x18f   :  { %v593_v20 = vrot.slane %v1155_v62, %v1173_v33  ;;  %v697_v63 = vrot.slane %v1165_v4, %v1177_v35 }
 0x192   :  { %v1159_v0 = vpop.xlane.xlu0 %411  ;;  %v1169_v10 = vpop.xlane.xlu1 %465 }
 0x193   :  { %v600_v60 = vrot.slane %v1159_v0, %v1175_v34  ;;  %v702_v1 = vrot.slane %v1169_v10, %v1179_v36 }
 0x196   :  { %v1163_v2 = vpop.xlane.xlu0 %414 }
 0x197   :  { %v607_v62 = vrot.slane %v1163_v2, %v1177_v35 }
 0x19a   :  { %v1167_v6 = vpop.xlane.xlu0 %417 }
 0x19b   :  { %v614_v0 = vrot.slane %v1167_v6, %v1179_v36 }
 0x19e   :  { %v1171_v17 = vpop.xlane.xlu0 %420 }
 0x19f   :  { %v621_v2 = vrot.slane %v1171_v17, %v1184_v41 }
 0x1a2   :  { %v1181_v37 = vpop.xlane.xlu0 %423 }
 0x1a3   :  { %v628_v6 = vrot.slane %v1181_v37, %v1188_v46 }
 0x1a6   :  { %v427_v7 = vpop.xlane.xlu0 %426 }
 0x1a7   :  { %v635_v35 = vrot.slane %v427_v7, %v1190_v47 }
 0x1aa   :  { %v430_v29 = vpop.xlane.xlu0 %429 }
 0x1ae   :  { %v433_v24 = vpop.xlane.xlu1 %432 }
 0x1af   :  { %v648_v42 = vrot.slane %v433_v24, %v538_v11 }
 0x1b2   :  { %v436_v39 = vpop.xlane.xlu1 %435 }
 0x1b3   :  { %v652_v43 = vrot.slane %v436_v39, %v543_v14  ;;  %v546_v14 = vsel %vm545_vm3, %v544_v40, %v539_v3  ;;  %v642_v39 = vrot.slane %v430_v29, %v1198_v50 }
 0x1b4   :  { %v553_v11 = vsel %vm552_vm4, %v551_v44, %v546_v14 }
 0x1b5   :  { %v653_v8 = vsel %vm545_vm3, %v652_v43, %v648_v42  ;;  %v560_v16 = vsel %vm559_vm5, %v558_v5, %v553_v11  ;;  %v819_v5 = vld [vmem:[%s1266_s3] ss:$0 sm:$0xff] }
 0x1b6   :  { %v658_v12 = vsel %vm552_vm4, %v657_v45, %v653_v8  ;;  %v469_v13 = vpop.xlane.xlu1 %468  ;;  %v567_v19 = vsel %vm566_vm6, %v565_v9, %v560_v16 }
 0x1b7   :  { %v663_v53 = vsel %vm559_vm5, %v662_v49, %v658_v12  ;;  %v574_v22 = vsel %vm573_vm7, %v572_v48, %v567_v19  ;;  %v707_v30 = vrot.slane %v469_v13, %v1184_v41 }
 0x1b8   :  { %v668_v15 = vsel %vm566_vm6, %v667_v51, %v663_v53  ;;  %v581_v24 = vsel %vm580_vm8, %v579_v54, %v574_v22 }
 0x1b9   :  { %v673_v57 = vsel %vm573_vm7, %v672_v52, %v668_v15  ;;  %v588_v26 = vsel %vm587_vm9, %v586_v18, %v581_v24 }
 0x1ba   :  { %v678_v59 = vsel %vm580_vm8, %v677_v55, %v673_v57  ;;  %v472_v21 = vpop.xlane.xlu1 %471  ;;  %v595_v28 = vsel %vm594_vm10, %v593_v20, %v588_v26 }
 0x1bb   :  { %v683_v23 = vsel %vm587_vm9, %v682_v56, %v678_v59  ;;  %v602_v32 = vsel %vm601_vm11, %v600_v60, %v595_v28  ;;  %v712_v33 = vrot.slane %v472_v21, %v1188_v46 }
 0x1bc   :  { %v688_v25 = vsel %vm594_vm10, %v687_v58, %v683_v23  ;;  %v609_v34 = vsel %vm608_vm12, %v607_v62, %v602_v32 }
 0x1bd   :  { %v693_v27 = vsel %vm601_vm11, %v692_v61, %v688_v25  ;;  %v616_v38 = vsel %vm615_vm13, %v614_v0, %v609_v34 }
 0x1be   :  { %v698_v4 = vsel %vm608_vm12, %v697_v63, %v693_v27  ;;  %v475_v31 = vpop.xlane.xlu1 %474  ;;  %v623_v37 = vsel %vm622_vm14, %v621_v2, %v616_v38 }
 0x1bf   :  { %v703_v10 = vsel %vm615_vm13, %v702_v1, %v698_v4  ;;  %v717_v36 = vrot.slane %v475_v31, %v1190_v47  ;;  %v630_v42 = vsel %vm629_vm15, %v628_v6, %v623_v37 }
 0x1c0   :  { %v708_v17 = vsel %vm622_vm14, %v707_v30, %v703_v10  ;;  %v637_v44 = vsel %vm636_vm0, %v635_v35, %v630_v42 }
 0x1c1   :  { %v713_v40 = vsel %vm629_vm15, %v712_v33, %v708_v17  ;;  %v644_v46 = vsel %vm643_vm1, %v642_v39, %v637_v44 }
 0x1c2   :  { %v478_v41 = vpop.xlane.xlu1 %477  ;;  %v718_v45 = vsel %vm636_vm0, %v717_v36, %v713_v40 }
 0x1c3   :  { %v722_v43 = vrot.slane %v478_v41, %v1198_v50 }
 0x1c5   :  { %v723_v47 = vsel %vm643_vm1, %v722_v43, %v718_v45 }
 0x1c6   :  { %v725_v3 = vsel %vm724_vm2, %v723_v47, %v644_v46 }
 0x1c7   :  { %870 = vmatmul.mubr.f32.vlgmr.msra.gmra.mrb[28].mxu1 %v725_v3 }
 0x29a   :  { %v793_v49 = vpop.f32.mrb[28].mxu1 }
 0x29b   :  { %v794_v8 = vadd.f32 %v819_v5, %v793_v49  ;;  %v871_v9 = vpop.f32.mrb[29].mxu1 }
 0x29d   :  { %797 = vst [vmem:[%s1267_s4] sm:$0x3] %v794_v8 }

</bundles_post_ra>
